<compile_context>
chip_gen: v5e
topology: v5e:2x2
jax: 0.10.0
libtpu: 0.0.40
codegen_flags: <defaults>
</compile_context>

<pallas_src>
import functools
import math

import jax
import jax.numpy as jnp
from jax import lax
from jax.experimental import pallas as pl
from jax.experimental.pallas import tpu as pltpu


_LANE = 128
_SUBLANE = 8
_H_CHUNK = 512            # max hidden-axis chunk processed per inner-loop step


def _round_up(x, m):
    return (x + m - 1) // m * m


# --------------------------------------------------------------------------
# One-time hardware / feature detection
# --------------------------------------------------------------------------
_CHIP_CFG = None
_SINGLE_BUFFER_OK = None


def _chip_config():
    """(vmem_cap_bytes, hn_align, default_tile_m), detected once per process."""
    global _CHIP_CFG
    if _CHIP_CFG is not None:
        return _CHIP_CFG
    vmem_phys = None
    kind = ""
    try:
        vmem_phys = int(pltpu.get_tpu_info().vmem_capacity_bytes)
    except Exception:
        vmem_phys = None
    try:
        kind = jax.devices()[0].device_kind.lower()
    except Exception:
        kind = ""
    if vmem_phys is None:
        vmem_phys = (64 << 20) if "7" in kind else (128 << 20)
    if vmem_phys >= (100 << 20):          # v5e / v6e: 128 MiB physical per TC
        vmem_cap, default_tile_m = (100 << 20), 512
    else:                                 # v7x: 64 MiB per TC
        vmem_cap, default_tile_m = (48 << 20), 256
    hn_align = 128 if "v5" in kind else 256   # v5e MXU 128x128, v6e/v7x 256x256
    _CHIP_CFG = (vmem_cap, hn_align, default_tile_m)
    return _CHIP_CFG


def _single_buffer_supported():
    """Decide ONCE whether pl.Buffered(1) (single-buffered grid-invariant
    operands) is accepted by this JAX build, via a tiny probe compile."""
    global _SINGLE_BUFFER_OK
    if _SINGLE_BUFFER_OK is not None:
        return _SINGLE_BUFFER_OK
    ok = hasattr(pl, "Buffered")
    if ok:
        try:
            def _copy(x_ref, o_ref):
                o_ref[...] = x_ref[...]

            probe = pl.pallas_call(
                _copy,
                out_shape=jax.ShapeDtypeStruct((8, 128), jnp.float32),
                grid=(1,),
                in_specs=[pl.BlockSpec((8, 128), lambda i: (0, 0),
                                       pipeline_mode=pl.Buffered(1))],
                out_specs=pl.BlockSpec((8, 128), lambda i: (0, 0)),
            )
            jax.block_until_ready(probe(jnp.zeros((8, 128), jnp.float32)))
        except Exception:
            ok = False
    _SINGLE_BUFFER_OK = ok
    return ok


# --------------------------------------------------------------------------
# Kernel
# --------------------------------------------------------------------------
def _mlp_kernel(x_ref, w1t_ref, b1_ref, w2t_ref, b2_ref, o_ref, acc_ref, *,
                h_chunk):
    # x_ref  : (TM, K)  bf16 rows of the flattened input
    # w1t_ref: (K, H)   W1.T (pre-transposed, bf16)
    # b1_ref : (1, H)   f32
    # w2t_ref: (H, N)   W2.T (bf16)
    # b2_ref : (1, N)   f32
    # o_ref  : (TM, N)  output (original dtype)
    # acc_ref: (TM, N)  f32 VMEM accumulator scratch
    acc_ref[...] = jnp.zeros_like(acc_ref)
    x = x_ref[...]                                   # loaded once, reused per chunk
    n_chunks = w1t_ref.shape[1] // h_chunk

    def chunk_body(c, carry):
        off = pl.multiple_of(c * h_chunk, h_chunk)
        # First matmul chunk (MXU, bf16 in / f32 out) + bias + ReLU in f32 (VPU).
        h = jnp.dot(x, w1t_ref[:, pl.ds(off, h_chunk)],
                    preferred_element_type=jnp.float32)
        h = jnp.maximum(h + b1_ref[:, pl.ds(off, h_chunk)], 0.0)
        # Second matmul chunk accumulates into f32 scratch; the (TM, H) hidden
        # intermediate never exists in full.
        acc_ref[...] += jnp.dot(h.astype(w2t_ref.dtype),
                                w2t_ref[pl.ds(off, h_chunk), :],
                                preferred_element_type=jnp.float32)
        return carry

    lax.fori_loop(0, n_chunks, chunk_body, 0, unroll=True)
    o_ref[...] = (acc_ref[...] + b2_ref[...]).astype(o_ref.dtype)


# --------------------------------------------------------------------------
# Jitted padded implementation
# --------------------------------------------------------------------------
@functools.partial(
    jax.jit,
    static_argnames=("tile_m", "h_chunk", "k_pad", "proj_dim",
                     "single_buffer_weights", "vmem_limit"))
def _projection_impl(x2d, w1t, b1r, w2t, b2r, *, tile_m, h_chunk, k_pad,
                     proj_dim, single_buffer_weights, vmem_limit):
    m, k = x2d.shape
    h_pad = w1t.shape[1]
    n_pad = w2t.shape[1]
    m_pad = _round_up(m, tile_m)

    # Skip the HBM pad copy entirely when no padding is needed; otherwise pad
    # and the bf16 cast fuse into a single pass under this jit.
    # TODO(synk): handle the M tail with in-kernel row masking instead of
    # padding to avoid the copy for very large activations.
    pad_m, pad_k = m_pad - m, k_pad - k
    if pad_m or pad_k:
        x2d = jnp.pad(x2d, ((0, pad_m), (0, pad_k)))
    xb = x2d.astype(w1t.dtype)                       # bf16 MXU operand

    grid = (m_pad // tile_m,)
    # Grid-invariant operands gain nothing from double-buffering.
    wkw = {"pipeline_mode": pl.Buffered(1)} if single_buffer_weights else {}
    in_specs = [
        pl.BlockSpec((tile_m, k_pad), lambda i: (i, 0)),
        pl.BlockSpec((k_pad, h_pad), lambda i: (0, 0), **wkw),
        pl.BlockSpec((1, h_pad), lambda i: (0, 0), **wkw),
        pl.BlockSpec((h_pad, n_pad), lambda i: (0, 0), **wkw),
        pl.BlockSpec((1, n_pad), lambda i: (0, 0), **wkw),
    ]
    out_spec = pl.BlockSpec((tile_m, n_pad), lambda i: (i, 0))

    flops = 2 * m_pad * (k_pad * h_pad + h_pad * n_pad)
    bytes_accessed = int(
        xb.size * 2 + w1t.size * 2 + w2t.size * 2
        + b1r.size * 4 + b2r.size * 4 + m_pad * n_pad * x2d.dtype.itemsize)

    out = pl.pallas_call(
        functools.partial(_mlp_kernel, h_chunk=h_chunk),
        out_shape=jax.ShapeDtypeStruct((m_pad, n_pad), x2d.dtype),
        grid_spec=pltpu.PrefetchScalarGridSpec(
            num_scalar_prefetch=0,
            grid=grid,
            in_specs=in_specs,
            out_specs=out_spec,
            scratch_shapes=[pltpu.VMEM((tile_m, n_pad), jnp.float32)],
        ),
        compiler_params=pltpu.CompilerParams(
            dimension_semantics=("parallel",),
            vmem_limit_bytes=vmem_limit,
        ),
        cost_estimate=pl.CostEstimate(
            flops=flops, transcendentals=0, bytes_accessed=bytes_accessed),
    )(xb, w1t, b1r, w2t, b2r)

    if m_pad > m or n_pad > proj_dim:
        out = out[:m, :proj_dim]
    return out


# --------------------------------------------------------------------------
# VMEM budgeting
# --------------------------------------------------------------------------
def _fit_tile_to_vmem(tile, k_pad, h_pad, n_pad, h_chunk, out_isize,
                      vmem_cap, weight_bufs):
    """Shrink the row tile until the per-core VMEM budget is met.
    Returns (tile, estimated_vmem_bytes)."""
    wbytes = weight_bufs * ((k_pad * h_pad + h_pad * n_pad) * 2   # bf16 weights
                            + (h_pad + n_pad) * 4)                # f32 biases
    budget = vmem_cap - wbytes - (4 << 20)                        # headroom
    if budget <= 0:
        # TODO(synk): when the resident weights alone exceed per-core VMEM
        # (most likely v7x, 64 MiB/TC), add a K and/or H grid reduction axis
        # with an output accumulator instead of keeping both matrices resident.
        raise ValueError(
            f"ProjectionLayer weights ({wbytes / 2**20:.1f} MiB resident) exceed "
            f"the {vmem_cap / 2**20:.0f} MiB per-core VMEM budget; reduce "
            "input/proj dims or tile the contraction over the grid.")

    def per_tile(t):
        return (2 * t * k_pad * 2            # double-buffered bf16 x tile
                + 2 * t * n_pad * out_isize  # double-buffered output tile
                + t * n_pad * 4              # f32 accumulator scratch
                + 2 * t * h_chunk * 4)       # live f32 hidden chunk (+ slack)

    while tile > _SUBLANE and per_tile(tile) > budget:
        tile = max(_SUBLANE, (tile // 2 // _SUBLANE) * _SUBLANE)
    return tile, wbytes + per_tile(tile) + (4 << 20)


# --------------------------------------------------------------------------
# Public API
# --------------------------------------------------------------------------
def prepare_params(w1, b1, w2, b2, *, compute_dtype=jnp.bfloat16):
    """Transpose / pad / cast the weights ONCE (hoist out of the per-call path).

    w1: (2*proj_dim, input_dim), b1: (2*proj_dim,),
    w2: (proj_dim, 2*proj_dim),  b2: (proj_dim,).
    """
    hidden, input_dim = w1.shape
    proj_dim = w2.shape[0]
    assert w2.shape[1] == hidden and b1.shape == (hidden,) and b2.shape == (proj_dim,)

    _, hn_align, _ = _chip_config()
    k_pad = _round_up(input_dim, _LANE)
    h_pad = _round_up(hidden, hn_align)
    n_pad = _round_up(proj_dim, hn_align)
    if h_pad <= _H_CHUNK:
        h_chunk = h_pad
    else:
        h_chunk = next(c for c in (_H_CHUNK, 256, _LANE) if h_pad % c == 0)

    def pad2(a, rpad, cpad):
        return jnp.pad(a, ((0, rpad), (0, cpad))) if (rpad or cpad) else a

    # Zero padding contributes exact zeros through both matmuls and the ReLU.
    w1t = pad2(w1.T, k_pad - input_dim, h_pad - hidden).astype(compute_dtype)
    w2t = pad2(w2.T, h_pad - hidden, n_pad - proj_dim).astype(compute_dtype)
    b1r = pad2(b1.reshape(1, hidden).astype(jnp.float32), 0, h_pad - hidden)
    b2r = pad2(b2.reshape(1, proj_dim).astype(jnp.float32), 0, n_pad - proj_dim)

    return {"w1t": w1t, "b1": b1r, "w2t": w2t, "b2": b2r,
            "input_dim": int(input_dim), "proj_dim": int(proj_dim),
            "k_pad": int(k_pad), "h_chunk": int(h_chunk)}


def projection_apply(x, params, *, tile_m=None):
    """Fast path: apply the projection with pre-prepared (padded) params."""
    input_dim, proj_dim = params["input_dim"], params["proj_dim"]
    if x.shape[-1] != input_dim:
        raise ValueError(f"expected last dim {input_dim}, got {x.shape[-1]}")
    lead = x.shape[:-1]
    m = math.prod(lead) if lead else 1
    x2d = x.reshape(m, input_dim)

    vmem_cap, _, default_tile = _chip_config()
    req = default_tile if tile_m is None else int(tile_m)
    req = max(_SUBLANE, (req // _SUBLANE) * _SUBLANE)

    m_sub = _round_up(m, _SUBLANE)
    if m_sub > _SUBLANE:
        # Keep >=2 grid steps so v7x's two TensorCores both get work.
        req = min(req, _round_up(-(-m_sub // 2), _SUBLANE))
    else:
        req = _SUBLANE

    single_buf = _single_buffer_supported()
    weight_bufs = 1 if single_buf else 2
    k_pad = params["k_pad"]
    h_pad = params["w1t"].shape[1]
    n_pad = params["w2t"].shape[1]
    out_isize = jnp.dtype(x.dtype).itemsize
    tile, est = _fit_tile_to_vmem(req, k_pad, h_pad, n_pad, params["h_chunk"],
                                  out_isize, vmem_cap, weight_bufs)
    vmem_limit = int(min(vmem_cap, max(est, 32 << 20)))

    out2d = _projection_impl(
        x2d, params["w1t"], params["b1"], params["w2t"], params["b2"],
        tile_m=tile, h_chunk=params["h_chunk"], k_pad=k_pad, proj_dim=proj_dim,
        single_buffer_weights=single_buf, vmem_limit=vmem_limit)
    return out2d.reshape(*lead, proj_dim)


def projection_layer(x, w1, b1, w2, b2, *, tile_m=None):
    """One-shot convenience wrapper (re-pads the weights on every call).
    For repeated calls hoist the prep: prepare_params() + projection_apply()."""
    return projection_apply(x, prepare_params(w1, b1, w2, b2), tile_m=tile_m)


# --------------------------------------------------------------------------
# Init / references / demo
# --------------------------------------------------------------------------
def init_params(key, input_dim, proj_dim, dtype=jnp.float32):
    """Deterministic init matching the shapes in ProjectionLayer.__init__."""
    hidden = 2 * proj_dim
    k1, k2, k3, k4 = jax.random.split(key, 4)
    bound1 = 1.0 / (input_dim ** 0.5)
    bound2 = 1.0 / (hidden ** 0.5)
    w1 = jax.random.uniform(k1, (hidden, input_dim), dtype, -bound1, bound1)
    b1 = jax.random.uniform(k2, (hidden,), dtype, -bound1, bound1)
    w2 = jax.random.uniform(k3, (proj_dim, hidden), dtype, -bound2, bound2)
    b2 = jax.random.uniform(k4, (proj_dim,), dtype, -bound2, bound2)
    return w1, b1, w2, b2


def reference_f32(x, w1, b1, w2, b2):
    h = jnp.maximum(x @ w1.T + b1, 0.0)
    return h @ w2.T + b2


def reference_bf16(x, w1, b1, w2, b2):
    """Reference applying the same bf16-operand / f32-accumulate recipe."""
    xb = x.astype(jnp.bfloat16)
    h = jnp.dot(xb, w1.T.astype(jnp.bfloat16),
                preferred_element_type=jnp.float32) + b1.astype(jnp.float32)
    h = jnp.maximum(h, 0.0)
    y = jnp.dot(h.astype(jnp.bfloat16), w2.T.astype(jnp.bfloat16),
                preferred_element_type=jnp.float32) + b2.astype(jnp.float32)
    return y


if __name__ == "__main__":
    key = jax.random.PRNGKey(0)
    kx1, kx2, kp1, kp2 = jax.random.split(key, 4)

    # Case 1: tiny shapes, single-step grid, feature padding (K 32->128, etc.).
    batch, input_dim, proj_dim = 8, 32, 64
    x = jax.random.normal(kx1, (batch, input_dim), jnp.float32)
    w1, b1, w2, b2 = init_params(kp1, input_dim, proj_dim)
    out = jax.block_until_ready(projection_layer(x, w1, b1, w2, b2))
    assert out.shape == (batch, proj_dim) and out.dtype == x.dtype
    assert jnp.allclose(out, reference_bf16(x, w1, b1, w2, b2),
                        atol=1e-2, rtol=1e-2)
    assert jnp.allclose(out, reference_f32(x, w1, b1, w2, b2),
                        atol=1e-1, rtol=1e-1)

    # Case 2: hoisted params, multi-step grid with a ragged M tail
    # (160 rows, tile 64 -> padded to 192, 3 grid steps).
    lead, seq, input_dim2, proj_dim2 = 2, 80, 96, 64
    x2 = jax.random.normal(kx2, (lead, seq, input_dim2), jnp.float32)
    p2 = init_params(kp2, input_dim2, proj_dim2)
    prepared = prepare_params(*p2)                 # weight prep done ONCE
    out2 = jax.block_until_ready(projection_apply(x2, prepared, tile_m=64))
    assert out2.shape == (lead, seq, proj_dim2)
    assert jnp.allclose(out2, reference_bf16(x2, *p2), atol=1e-2, rtol=1e-2)
    assert jnp.allclose(out2, reference_f32(x2, *p2), atol=1e-1, rtol=1e-1)

    print("KERNEL_OK")
</pallas_src>

<mosaic_0001>
module attributes {stable_mosaic.version = 11 : i64} {
  func.func @_copy(%arg0: i32, %arg1: memref<8x128xf32, #tpu.memory_space<vmem>>, %arg2: memref<8x128xf32, #tpu.memory_space<vmem>>) attributes {dimension_semantics = [#tpu.dimension_semantics<arbitrary>], iteration_bounds = array<i64: 1>, scalar_prefetch = 0 : i64, scratch_operands = 0 : i64, tpu.core_type = #tpu.core_type<tc>, window_params = [{pipeline_mode = #tpu.pipeline_mode<synchronous>, transform_indices = @transform_0, window_bounds = array<i64: 8, 128>}, {pipeline_mode = #tpu.pipeline_mode<synchronous>, transform_indices = @transform_1, window_bounds = array<i64: 8, 128>}]} {
    %c0 = arith.constant 0 : index
    %c0_0 = arith.constant 0 : index
    %0 = vector.load %arg1[%c0, %c0_0] : memref<8x128xf32, #tpu.memory_space<vmem>>, vector<8x128xf32>
    %c0_1 = arith.constant 0 : index
    %c0_2 = arith.constant 0 : index
    %1 = vector.load %arg2[%c0_1, %c0_2] : memref<8x128xf32, #tpu.memory_space<vmem>>, vector<8x128xf32>
    tpu.vector_store %arg2[%c0_1, %c0_2], %0 {strides = array<i32>} : memref<8x128xf32, #tpu.memory_space<vmem>>, vector<8x128xf32>,
    return
  }
  func.func @transform_0(%arg0: i32) -> (i32, i32) {
    %c0_i32 = arith.constant 0 : i32
    %c0_i32_0 = arith.constant 0 : i32
    %c0_i32_1 = arith.constant 0 : i32
    return %c0_i32, %c0_i32_0 : i32, i32
  }
  func.func @transform_1(%arg0: i32) -> (i32, i32) {
    %c0_i32 = arith.constant 0 : i32
    %c0_i32_0 = arith.constant 0 : i32
    %c0_i32_1 = arith.constant 0 : i32
    return %c0_i32, %c0_i32_0 : i32, i32
  }
}

module attributes {stable_mosaic.version = 11 : i64} {
  func.func @_mlp_kernel(%arg0: i32, %arg1: memref<8x128xbf16, #tpu.memory_space<vmem>>, %arg2: memref<128x256xbf16, #tpu.memory_space<vmem>>, %arg3: memref<1x256xf32, #tpu.memory_space<vmem>>, %arg4: memref<256x256xbf16, #tpu.memory_space<vmem>>, %arg5: memref<1x256xf32, #tpu.memory_space<vmem>>, %arg6: memref<8x256xf32, #tpu.memory_space<vmem>>, %arg7: memref<8x256xf32, #tpu.memory_space<vmem>>) attributes {dimension_semantics = [#tpu.dimension_semantics<parallel>], iteration_bounds = array<i64: 1>, scalar_prefetch = 0 : i64, scratch_operands = 1 : i64, tpu.core_type = #tpu.core_type<tc>, window_params = [{transform_indices = @transform_0, window_bounds = array<i64: 8, 128>}, {pipeline_mode = #tpu.pipeline_mode<synchronous>, transform_indices = @transform_1, window_bounds = array<i64: 128, 256>}, {pipeline_mode = #tpu.pipeline_mode<synchronous>, transform_indices = @transform_2, window_bounds = array<i64: 1, 256>}, {pipeline_mode = #tpu.pipeline_mode<synchronous>, transform_indices = @transform_3, window_bounds = array<i64: 256, 256>}, {pipeline_mode = #tpu.pipeline_mode<synchronous>, transform_indices = @transform_4, window_bounds = array<i64: 1, 256>}, {transform_indices = @transform_5, window_bounds = array<i64: 8, 256>}]} {
    %cst = arith.constant 0.000000e+00 : f32
    %0 = vector.broadcast %cst : f32 to vector<8x256xf32>
    %c0 = arith.constant 0 : index
    %c0_0 = arith.constant 0 : index
    %1 = vector.load %arg7[%c0, %c0_0] : memref<8x256xf32, #tpu.memory_space<vmem>>, vector<8x256xf32>
    tpu.vector_store %arg7[%c0, %c0_0], %0 {strides = array<i32>} : memref<8x256xf32, #tpu.memory_space<vmem>>, vector<8x256xf32>,
    %c0_1 = arith.constant 0 : index
    %c0_2 = arith.constant 0 : index
    %2 = vector.load %arg1[%c0_1, %c0_2] : memref<8x128xbf16, #tpu.memory_space<vmem>>, vector<8x128xbf16>
    %c0_i32 = arith.constant 0 : i32
    %c256_i32 = arith.constant 256 : i32
    %3 = arith.muli %c0_i32, %c256_i32 : i32
    %4 = tpu.assume_multiple %3, 256 : i32
    %c0_3 = arith.constant 0 : index
    %5 = arith.index_cast %4 : i32 to index
    %6 = vector.load %arg2[%c0_3, %5] : memref<128x256xbf16, #tpu.memory_space<vmem>>, vector<128x256xbf16>
    %cst_4 = arith.constant dense<0.000000e+00> : vector<8x256xf32>
    %7 = tpu.matmul %2, %6, %cst_4 {dimension_numbers = #tpu.dot_dimension_numbers<[1], [0], [0], [1], [0, 0, 1, 1], [], []>} : vector<8x128xbf16>, vector<128x256xbf16>, vector<8x256xf32> -> vector<8x256xf32>
    %c0_5 = arith.constant 0 : index
    %8 = arith.index_cast %4 : i32 to index
    %9 = vector.load %arg3[%c0_5, %8] : memref<1x256xf32, #tpu.memory_space<vmem>>, vector<1x256xf32>
    %10 = vector.broadcast %9 : vector<1x256xf32> to vector<8x256xf32>
    %11 = arith.addf %7, %10 : vector<8x256xf32>
    %cst_6 = arith.constant 0.000000e+00 : f32
    %12 = vector.broadcast %cst_6 : f32 to vector<8x256xf32>
    %13 = arith.maximumf %11, %12 : vector<8x256xf32>
    %c0_7 = arith.constant 0 : index
    %c0_8 = arith.constant 0 : index
    %14 = vector.load %arg7[%c0_7, %c0_8] : memref<8x256xf32, #tpu.memory_space<vmem>>, vector<8x256xf32>
    %15 = arith.truncf %13 : vector<8x256xf32> to vector<8x256xbf16>
    %16 = arith.index_cast %4 : i32 to index
    %c0_9 = arith.constant 0 : index
    %17 = vector.load %arg4[%16, %c0_9] : memref<256x256xbf16, #tpu.memory_space<vmem>>, vector<256x256xbf16>
    %cst_10 = arith.constant dense<0.000000e+00> : vector<8x256xf32>
    %18 = tpu.matmul %15, %17, %cst_10 {dimension_numbers = #tpu.dot_dimension_numbers<[1], [0], [0], [1], [0, 0, 1, 1], [], []>} : vector<8x256xbf16>, vector<256x256xbf16>, vector<8x256xf32> -> vector<8x256xf32>
    %19 = arith.addf %14, %18 : vector<8x256xf32>
    %c0_11 = arith.constant 0 : index
    %c0_12 = arith.constant 0 : index
    %20 = vector.load %arg7[%c0_11, %c0_12] : memref<8x256xf32, #tpu.memory_space<vmem>>, vector<8x256xf32>
    tpu.vector_store %arg7[%c0_11, %c0_12], %19 {strides = array<i32>} : memref<8x256xf32, #tpu.memory_space<vmem>>, vector<8x256xf32>,
    %c1_i32 = arith.constant 1 : i32
    %c0_13 = arith.constant 0 : index
    %c0_14 = arith.constant 0 : index
    %21 = vector.load %arg7[%c0_13, %c0_14] : memref<8x256xf32, #tpu.memory_space<vmem>>, vector<8x256xf32>
    %c0_15 = arith.constant 0 : index
    %c0_16 = arith.constant 0 : index
    %22 = vector.load %arg5[%c0_15, %c0_16] : memref<1x256xf32, #tpu.memory_space<vmem>>, vector<1x256xf32>
    %23 = vector.broadcast %22 : vector<1x256xf32> to vector<8x256xf32>
    %24 = arith.addf %21, %23 : vector<8x256xf32>
    %c0_17 = arith.constant 0 : index
    %c0_18 = arith.constant 0 : index
    %25 = vector.load %arg6[%c0_17, %c0_18] : memref<8x256xf32, #tpu.memory_space<vmem>>, vector<8x256xf32>
    tpu.vector_store %arg6[%c0_17, %c0_18], %24 {strides = array<i32>} : memref<8x256xf32, #tpu.memory_space<vmem>>, vector<8x256xf32>,
    return
  }
  func.func @transform_0(%arg0: i32) -> (i32, i32) {
    %c0_i32 = arith.constant 0 : i32
    %c0_i32_0 = arith.constant 0 : i32
    return %arg0, %c0_i32 : i32, i32
  }
  func.func @transform_1(%arg0: i32) -> (i32, i32) {
    %c0_i32 = arith.constant 0 : i32
    %c0_i32_0 = arith.constant 0 : i32
    %c0_i32_1 = arith.constant 0 : i32
    return %c0_i32, %c0_i32_0 : i32, i32
  }
  func.func @transform_2(%arg0: i32) -> (i32, i32) {
    %c0_i32 = arith.constant 0 : i32
    %c0_i32_0 = arith.constant 0 : i32
    %c0_i32_1 = arith.constant 0 : i32
    return %c0_i32, %c0_i32_0 : i32, i32
  }
  func.func @transform_3(%arg0: i32) -> (i32, i32) {
    %c0_i32 = arith.constant 0 : i32
    %c0_i32_0 = arith.constant 0 : i32
    %c0_i32_1 = arith.constant 0 : i32
    return %c0_i32, %c0_i32_0 : i32, i32
  }
  func.func @transform_4(%arg0: i32) -> (i32, i32) {
    %c0_i32 = arith.constant 0 : i32
    %c0_i32_0 = arith.constant 0 : i32
    %c0_i32_1 = arith.constant 0 : i32
    return %c0_i32, %c0_i32_0 : i32, i32
  }
  func.func @transform_5(%arg0: i32) -> (i32, i32) {
    %c0_i32 = arith.constant 0 : i32
    %c0_i32_0 = arith.constant 0 : i32
    return %arg0, %c0_i32 : i32, i32
  }
}

</mosaic_0001>

<bundles_post_ra>
// kernel: tpu_custom_call.1
= control target key start
LH: loop header
LB: loop body
LE: loop exit
PB: predicated region body
PF: predicated region fallthrough
CT: control target
= control target key end

     0   :  { %6 = vsyncpa [#allocation3], 0  ;;  %s114_s0 = inlined_call_operand.hbm [shape: f32[8,128], index: 0, kind: input, shape index: {}]   ;;  %s115_s1 = inlined_call_operand.hbm [shape: f32[8,128], index: 1, kind: output, shape index: {}]  }
   0x1   :  { %7 = vsyncpa [#allocation4], 0  ;;  %s13_s8 = sshll.u32 %s114_s0, 4  ;;  %s96_s9 = smov [#allocation2]   ;;  %s14_s8 = int_to_ptr.hbm [resolvable:$true] %s13_s8 }
   0x2   :  { %s15_s10 = sshll.u32 %s96_s9, 4  ;;  %s16_s10 = int_to_ptr.vmem [resolvable:$true] %s15_s10 }
   0x3   :  { %18 = dma.hbm_to_vmem [thread:$0]  %s14_s8, 128, %s16_s10, [#allocation3]  }
   0x4   :  { %92 = dma.done.wait [#allocation3], 128  }
   0x5   :  { %93 = vsyncadd [#allocation3], 4294967168  ;;  %s97_s11 = smov [#allocation5]   ;;  %s32_s15 = sshll.u32 %s115_s1, 4  ;;  %v23_v0 = vld [vmem:[#allocation2] sm:$0xff]  ;;  %s33_s15 = int_to_ptr.hbm [resolvable:$true] %s32_s15 }
   0x6   :  { %s30_s12 = sshll.u32 %s97_s11, 4  ;;  %24 = vst [vmem:[#allocation5] sm:$0xff] %v23_v0  ;;  %s31_s12 = int_to_ptr.vmem [resolvable:$true] %s30_s12 }
   0x7   :  { %35 = dma.vmem_to_hbm [thread:$0]  %s31_s12, 128, %s33_s15, [#allocation4]  }
   0x8   :  { %94 = dma.done.wait [#allocation4], 128  }
   0x9   :  { %95 = vsyncadd [#allocation4], 4294967168 }
   0xa   :  { %40 = vsyncpa [#allocation3], 1 }
   0xb   :  { %41 = vsyncpa [#allocation4], 1 }

// kernel: _projection_impl.1
= control target key start
LH: loop header
LB: loop body
LE: loop exit
PB: predicated region body
PF: predicated region fallthrough
CT: control target
= control target key end

     0   :  { %10 = vsyncpa [#allocation4], 0  ;;  %s809_s0 = inlined_call_operand.vmem [shape: bf16[8,128], index: 0, kind: input, shape index: {}]   ;;  %s810_s1 = inlined_call_operand.hbm [shape: bf16[128,256], index: 1, kind: input, shape index: {}]   ;;  %s811_s2 = inlined_call_operand.vmem [shape: f32[1,256], index: 2, kind: input, shape index: {}]   ;;  %s812_s3 = inlined_call_operand.hbm [shape: bf16[256,256], index: 3, kind: input, shape index: {}]   ;;  %s813_s4 = inlined_call_operand.vmem [shape: f32[1,256], index: 4, kind: input, shape index: {}]   ;;  %s814_s5 = inlined_call_operand.vmem [shape: f32[8,256], index: 5, kind: output, shape index: {}]  }
   0x1   :  { %s18_s20 = sshll.u32 %s810_s1, 4  ;;  %s19_s20 = int_to_ptr.hbm [resolvable:$true] %s18_s20 }
   0x2   :  { %11 = vsyncpa [#allocation6], 0  ;;  %s754_s21 = smov [#allocation3]   ;;  %s33_s25 = sshll.u32 %s812_s3, 4  ;;  %s34_s25 = int_to_ptr.hbm [resolvable:$true] %s33_s25 }
   0x3   :  { %s20_s22 = sshll.u32 %s754_s21, 4  ;;  %s755_s26 = smov 128   ;;  %s21_s22 = int_to_ptr.vmem [resolvable:$true] %s20_s22 }
   0x4   :  { %s756_s27 = smov 8   ;;  %s757_s28 = smov [#allocation5]  }
   0x5   :  { %26 = dma.hbm_to_vmem [thread:$0]  %s19_s20, 2048, %s21_s22, [#allocation4], %s755_s26, %s755_s26, %s756_s27  }
   0x6   :  { %s35_s29 = sshll.u32 %s757_s28, 4  ;;  %s36_s29 = int_to_ptr.vmem [resolvable:$true] %s35_s29 }
   0x7   :  { %41 = dma.hbm_to_vmem [thread:$0]  %s34_s25, 4096, %s36_s29, [#allocation6], %s755_s26, %s755_s26, %s756_s27  }
   0x8   :  { %750 = dma.done.wait [#allocation4], 2048  }
   0x9   :  { %751 = vsyncadd [#allocation4], 4294965248 }
   0xa   :  { %752 = dma.done.wait [#allocation6], 4096  }
   0xb   :  { %753 = vsyncadd [#allocation6], 4294963200  ;;  %v516_v0 = vld [vmem:[#allocation3 + $0x70] sm:$0xf]  ;;  %v665_v1 = vld [vmem:[#allocation3 + $0x74] sm:$0xf0] }
   0xc   :  { %v664_v2 = vld [vmem:[#allocation3 + $0x74] sm:$0xf]  ;;  %v517_v3 = vor.u32 %v665_v1, %v516_v0  ;;  %v518_v4 = vld [vmem:[#allocation3 + $0x78] sm:$0xf0]  ;;  %v508_v5 = vld [vmem:[#allocation3 + $0x60] sm:$0xf] }
   0xd   :  { %v663_v6 = vld [vmem:[#allocation3 + $0x64] sm:$0xf0]  ;;  %v521_v7 = vor.u32 %v664_v2, %v518_v4  ;;  %v662_v8 = vld [vmem:[#allocation3 + $0x64] sm:$0xf]  ;;  %v510_v9 = vld [vmem:[#allocation3 + $0x68] sm:$0xf0] }
   0xe   :  { %157 = vmatpush.bf16.msra.mxu0 %v517_v3  ;;  %v509_v10 = vor.u32 %v663_v6, %v508_v5  ;;  %v513_v11 = vor.u32 %v662_v8, %v510_v9  ;;  %v500_v12 = vld [vmem:[#allocation3 + $0x50] sm:$0xf]  ;;  %v661_v13 = vld [vmem:[#allocation3 + $0x54] sm:$0xf0]  ;;  %v660_v14 = vld [vmem:[#allocation3 + $0x54] sm:$0xf] }
   0xf   :  { %170 = vmatpush.bf16.msra.mxu1 %v521_v7  ;;  %v502_v15 = vld [vmem:[#allocation3 + $0x58] sm:$0xf0]  ;;  %v501_v16 = vor.u32 %v661_v13, %v500_v12  ;;  %v492_v18 = vld [vmem:[#allocation3 + $0x40] sm:$0xf]  ;;  %v659_v19 = vld [vmem:[#allocation3 + $0x44] sm:$0xf0] }
  0x10   :  { %v505_v17 = vor.u32 %v660_v14, %v502_v15  ;;  %v658_v20 = vld [vmem:[#allocation3 + $0x44] sm:$0xf]  ;;  %v494_v21 = vld [vmem:[#allocation3 + $0x48] sm:$0xf0]  ;;  %v493_v22 = vor.u32 %v659_v19, %v492_v18  ;;  %v580_v23 = vld [vmem:[#allocation5 + $0x70] sm:$0xf] }
  0x11   :  { %v681_v24 = vld [vmem:[#allocation5 + $0x74] sm:$0xf0]  ;;  %v644_v25 = vld [vmem:[#allocation5 + $0xf0] sm:$0xf]  ;;  %v497_v26 = vor.u32 %v658_v20, %v494_v21  ;;  %v656_v31 = vld [vmem:[#allocation3 + $0x34] sm:$0xf] }
  0x12   :  { %158 = vmatpush.bf16.msra.mxu0 %v509_v10  ;;  %v484_v27 = vld [vmem:[#allocation3 + $0x30] sm:$0xf]  ;;  %v657_v28 = vld [vmem:[#allocation3 + $0x34] sm:$0xf0]  ;;  %v581_v29 = vor.u32 %v681_v24, %v580_v23  ;;  %v486_v32 = vld [vmem:[#allocation3 + $0x38] sm:$0xf0] }
  0x13   :  { %171 = vmatpush.bf16.msra.mxu1 %v513_v11  ;;  %v697_v30 = vld [vmem:[#allocation5 + $0xf4] sm:$0xf0]  ;;  %v572_v34 = vld [vmem:[#allocation5 + $0x60] sm:$0xf]  ;;  %v679_v35 = vld [vmem:[#allocation5 + $0x64] sm:$0xf0]  ;;  %v485_v38 = vor.u32 %v657_v28, %v484_v27  ;;  %v489_v43 = vor.u32 %v656_v31, %v486_v32 }
  0x14   :  { %v645_v33 = vor.u32 %v697_v30, %v644_v25  ;;  %384 = vmatpush.bf16.msra.mxu2 %v581_v29  ;;  %v636_v36 = vld [vmem:[#allocation5 + $0xe0] sm:$0xf]  ;;  %v695_v37 = vld [vmem:[#allocation5 + $0xe4] sm:$0xf0]  ;;  %v573_v41 = vor.u32 %v679_v35, %v572_v34  ;;  %v654_v44 = vld [vmem:[#allocation3 + $0x24] sm:$0xf] }
  0x15   :  { %v476_v39 = vld [vmem:[#allocation3 + $0x20] sm:$0xf]  ;;  %v655_v40 = vld [vmem:[#allocation3 + $0x24] sm:$0xf0]  ;;  %v637_v42 = vor.u32 %v695_v37, %v636_v36  ;;  %v564_v45 = vld [vmem:[#allocation5 + $0x50] sm:$0xf] }
  0x16   :  { %159 = vmatpush.bf16.msra.mxu0 %v501_v16  ;;  %397 = vmatpush.bf16.msra.mxu3 %v645_v33  ;;  %v677_v46 = vld [vmem:[#allocation5 + $0x54] sm:$0xf0]  ;;  %v478_v47 = vld [vmem:[#allocation3 + $0x28] sm:$0xf0]  ;;  %v628_v48 = vld [vmem:[#allocation5 + $0xd0] sm:$0xf]  ;;  %v477_v51 = vor.u32 %v655_v40, %v476_v39 }
  0x17   :  { %172 = vmatpush.bf16.msra.mxu1 %v505_v17  ;;  %v693_v49 = vld [vmem:[#allocation5 + $0xd4] sm:$0xf0]  ;;  %v565_v50 = vor.u32 %v677_v46, %v564_v45  ;;  %v468_v52 = vld [vmem:[#allocation3 + $0x10] sm:$0xf]  ;;  %v556_v54 = vld [vmem:[#allocation5 + $0x40] sm:$0xf]  ;;  %v481_v56 = vor.u32 %v654_v44, %v478_v47 }
  0x18   :  { %385 = vmatpush.bf16.msra.mxu2 %v573_v41  ;;  %v629_v53 = vor.u32 %v693_v49, %v628_v48  ;;  %v675_v55 = vld [vmem:[#allocation5 + $0x44] sm:$0xf0]  ;;  %v653_v57 = vld [vmem:[#allocation3 + $0x14] sm:$0xf0]  ;;  %v620_v58 = vld [vmem:[#allocation5 + $0xc0] sm:$0xf] }
  0x19   :  { %v691_v59 = vld [vmem:[#allocation5 + $0xc4] sm:$0xf0]  ;;  %v652_v60 = vld [vmem:[#allocation3 + $0x14] sm:$0xf]  ;;  %v470_v61 = vld [vmem:[#allocation3 + $0x18] sm:$0xf0]  ;;  %v557_v63 = vor.u32 %v675_v55, %v556_v54  ;;  %v469_v0 = vor.u32 %v653_v57, %v468_v52 }
  0x1a   :  { %160 = vmatpush.bf16.msra.mxu0 %v493_v22  ;;  %398 = vmatpush.bf16.msra.mxu3 %v637_v42  ;;  %v460_v62 = vld [vmem:[#allocation3] sm:$0xf]  ;;  %v651_v1 = vld [vmem:[#allocation3 + $0x4] sm:$0xf0]  ;;  %v621_v2 = vor.u32 %v691_v59, %v620_v58  ;;  %v548_v3 = vld [vmem:[#allocation5 + $0x30] sm:$0xf]  ;;  %v473_v5 = vor.u32 %v652_v60, %v470_v61 }
  0x1b   :  { %173 = vmatpush.bf16.msra.mxu1 %v497_v26  ;;  %v673_v4 = vld [vmem:[#allocation5 + $0x34] sm:$0xf0]  ;;  %v650_v6 = vld [vmem:[#allocation3 + $0x4] sm:$0xf]  ;;  %v612_v7 = vld [vmem:[#allocation5 + $0xb0] sm:$0xf]  ;;  %v461_v15 = vor.u32 %v651_v1, %v460_v62 }
  0x1c   :  { %386 = vmatpush.bf16.msra.mxu2 %v565_v50  ;;  %v689_v8 = vld [vmem:[#allocation5 + $0xb4] sm:$0xf0]  ;;  %v462_v9 = vld [vmem:[#allocation3 + $0x8] sm:$0xf0]  ;;  %v680_v10 = vld [vmem:[#allocation5 + $0x74] sm:$0xf]  ;;  %v549_v14 = vor.u32 %v673_v4, %v548_v3 }
  0x1d   :  { %v582_v11 = vld [vmem:[#allocation5 + $0x78] sm:$0xf0]  ;;  %v696_v12 = vld [vmem:[#allocation5 + $0xf4] sm:$0xf]  ;;  %v613_v16 = vor.u32 %v689_v8, %v612_v7  ;;  %v540_v17 = vld [vmem:[#allocation5 + $0x20] sm:$0xf]  ;;  %v465_v19 = vor.u32 %v650_v6, %v462_v9 }
  0x1e   :  { %161 = vmatpush.bf16.msra.mxu0 %v485_v38  ;;  %399 = vmatpush.bf16.msra.mxu3 %v629_v53  ;;  %v646_v13 = vld [vmem:[#allocation5 + $0xf8] sm:$0xf0]  ;;  %v671_v18 = vld [vmem:[#allocation5 + $0x24] sm:$0xf0]  ;;  %v585_v20 = vor.u32 %v680_v10, %v582_v11  ;;  %v604_v21 = vld [vmem:[#allocation5 + $0xa0] sm:$0xf] }
  0x1f   :  { %174 = vmatpush.bf16.msra.mxu1 %v489_v43  ;;  %v687_v22 = vld [vmem:[#allocation5 + $0xa4] sm:$0xf0]  ;;  %v649_v23 = vor.u32 %v696_v12, %v646_v13  ;;  %v678_v24 = vld [vmem:[#allocation5 + $0x64] sm:$0xf]  ;;  %v574_v25 = vld [vmem:[#allocation5 + $0x68] sm:$0xf0]  ;;  %v541_v28 = vor.u32 %v671_v18, %v540_v17 }
  0x20   :  { %387 = vmatpush.bf16.msra.mxu2 %v557_v63  ;;  %v694_v26 = vld [vmem:[#allocation5 + $0xe4] sm:$0xf]  ;;  %v638_v27 = vld [vmem:[#allocation5 + $0xe8] sm:$0xf0]  ;;  %v54_v29 = vld [vmem:[%s809_s0] sm:$0xf]  ;;  %v605_v30 = vor.u32 %v687_v22, %v604_v21  ;;  %v577_v31 = vor.u32 %v678_v24, %v574_v25 }
  0x21   :  { %v641_v32 = vor.u32 %v694_v26, %v638_v27  ;;  %v676_v33 = vld [vmem:[#allocation5 + $0x54] sm:$0xf]  ;;  %v566_v34 = vld [vmem:[#allocation5 + $0x58] sm:$0xf0]  ;;  %v674_v39 = vld [vmem:[#allocation5 + $0x44] sm:$0xf] }
  0x22   :  { %162 = vmatpush.bf16.msra.mxu0 %v477_v51  ;;  %400 = vmatpush.bf16.msra.mxu3 %v621_v2  ;;  %v692_v35 = vld [vmem:[#allocation5 + $0xd4] sm:$0xf]  ;;  %v630_v36 = vld [vmem:[#allocation5 + $0xd8] sm:$0xf0]  ;;  %v569_v37 = vor.u32 %v676_v33, %v566_v34  ;;  %v558_v40 = vld [vmem:[#allocation5 + $0x48] sm:$0xf0] }
  0x23   :  { %175 = vmatpush.bf16.msra.mxu1 %v481_v56  ;;  %v633_v38 = vor.u32 %v692_v35, %v630_v36  ;;  %v690_v41 = vld [vmem:[#allocation5 + $0xc4] sm:$0xf]  ;;  %v622_v42 = vld [vmem:[#allocation5 + $0xc8] sm:$0xf0]  ;;  %v561_v43 = vor.u32 %v674_v39, %v558_v40  ;;  %v672_v45 = vld [vmem:[#allocation5 + $0x34] sm:$0xf] }
  0x24   :  { %388 = vmatpush.bf16.msra.mxu2 %v549_v14  ;;  %v625_v44 = vor.u32 %v690_v41, %v622_v42  ;;  %v550_v46 = vld [vmem:[#allocation5 + $0x38] sm:$0xf0]  ;;  %v688_v47 = vld [vmem:[#allocation5 + $0xb4] sm:$0xf]  ;;  %v670_v51 = vld [vmem:[#allocation5 + $0x24] sm:$0xf] }
  0x25   :  { %v614_v48 = vld [vmem:[#allocation5 + $0xb8] sm:$0xf0]  ;;  %v553_v49 = vor.u32 %v672_v45, %v550_v46  ;;  %v542_v52 = vld [vmem:[#allocation5 + $0x28] sm:$0xf0]  ;;  %v686_v53 = vld [vmem:[#allocation5 + $0xa4] sm:$0xf] }
  0x26   :  { %163 = vmatpush.bf16.msra.mxu0 %v469_v0  ;;  %401 = vmatpush.bf16.msra.mxu3 %v613_v16  ;;  %v617_v50 = vor.u32 %v688_v47, %v614_v48  ;;  %v606_v54 = vld [vmem:[#allocation5 + $0xa8] sm:$0xf0]  ;;  %v545_v55 = vor.u32 %v670_v51, %v542_v52  ;;  %v532_v57 = vld [vmem:[#allocation5 + $0x10] sm:$0xf]  ;;  %v669_v58 = vld [vmem:[#allocation5 + $0x14] sm:$0xf0] }
  0x27   :  { %176 = vmatpush.bf16.msra.mxu1 %v473_v5  ;;  %v609_v56 = vor.u32 %v686_v53, %v606_v54  ;;  %v596_v59 = vld [vmem:[#allocation5 + $0x90] sm:$0xf]  ;;  %v533_v60 = vor.u32 %v669_v58, %v532_v57  ;;  %v685_v61 = vld [vmem:[#allocation5 + $0x94] sm:$0xf0]  ;;  %v668_v62 = vld [vmem:[#allocation5 + $0x14] sm:$0xf] }
  0x28   :  { %389 = vmatpush.bf16.msra.mxu2 %v541_v28  ;;  %v534_v63 = vld [vmem:[#allocation5 + $0x18] sm:$0xf0]  ;;  %v597_v0 = vor.u32 %v685_v61, %v596_v59  ;;  %v684_v2 = vld [vmem:[#allocation5 + $0x94] sm:$0xf]  ;;  %v524_v5 = vld [vmem:[#allocation5] sm:$0xf] }
  0x29   :  { %v537_v1 = vor.u32 %v668_v62, %v534_v63  ;;  %v598_v3 = vld [vmem:[#allocation5 + $0x98] sm:$0xf0]  ;;  %v667_v6 = vld [vmem:[#allocation5 + $0x4] sm:$0xf0]  ;;  %v588_v7 = vld [vmem:[#allocation5 + $0x80] sm:$0xf] }
  0x2a   :  { %164 = vmatpush.bf16.msra.mxu0 %v461_v15  ;;  %402 = vmatpush.bf16.msra.mxu3 %v605_v30  ;;  %v601_v4 = vor.u32 %v684_v2, %v598_v3  ;;  %v525_v8 = vor.u32 %v667_v6, %v524_v5  ;;  %v683_v9 = vld [vmem:[#allocation5 + $0x84] sm:$0xf0]  ;;  %v666_v10 = vld [vmem:[#allocation5 + $0x4] sm:$0xf]  ;;  %v526_v11 = vld [vmem:[#allocation5 + $0x8] sm:$0xf0] }
  0x2b   :  { %177 = vmatpush.bf16.msra.mxu1 %v465_v19  ;;  %v589_v12 = vor.u32 %v683_v9, %v588_v7  ;;  %v529_v13 = vor.u32 %v666_v10, %v526_v11  ;;  %v682_v14 = vld [vmem:[#allocation5 + $0x84] sm:$0xf]  ;;  %v590_v15 = vld [vmem:[#allocation5 + $0x88] sm:$0xf0]  ;;  %v71_v17 = vld [vmem:[%s811_s2] sm:$0x3] }
  0x2c   :  { %390 = vmatpush.bf16.msra.mxu2 %v533_v60  ;;  %v593_v16 = vor.u32 %v682_v14, %v590_v15  ;;  %v73_v18 = vperm.slane %v71_v17, 0  ;;  %v74_v19 = vperm.slane %v71_v17, 1  ;;  %v442_v30 = vld [vmem:[%s813_s4] sm:$0x3] }
  0x2d   :  { %165 = vmatmul.bf16.vlgmr.msra.gmra.mxu0 %v54_v29 }
  0x2e   :  { %410 = vmatpush.bf16.msrb.mxu0 %v585_v20  ;;  %178 = vmatmul.bf16.vlgmr.msra.gmra.mxu1 %v54_v29 }
  0x2f   :  { %423 = vmatpush.bf16.msrb.mxu1 %v649_v23  ;;  %403 = vmatpush.bf16.msra.mxu3 %v597_v0 }
  0x30   :  { %391 = vmatpush.bf16.msra.mxu2 %v525_v8 }
  0x32   :  { %411 = vmatpush.bf16.msrb.mxu0 %v577_v31 }
  0x33   :  { %424 = vmatpush.bf16.msrb.mxu1 %v641_v32  ;;  %404 = vmatpush.bf16.msra.mxu3 %v589_v12  ;;  %v445_v32 = vperm.slane %v442_v30, 1 }
  0x36   :  { %412 = vmatpush.bf16.msrb.mxu0 %v569_v37  ;;  %v444_v37 = vperm.slane %v442_v30, 0 }
  0x37   :  { %425 = vmatpush.bf16.msrb.mxu1 %v633_v38 }
  0x3a   :  { %413 = vmatpush.bf16.msrb.mxu0 %v561_v43 }
  0x3b   :  { %426 = vmatpush.bf16.msrb.mxu1 %v625_v44 }
  0x3e   :  { %414 = vmatpush.bf16.msrb.mxu0 %v553_v49 }
  0x3f   :  { %427 = vmatpush.bf16.msrb.mxu1 %v617_v50 }
  0x42   :  { %415 = vmatpush.bf16.msrb.mxu0 %v545_v55 }
  0x43   :  { %428 = vmatpush.bf16.msrb.mxu1 %v609_v56 }
  0x46   :  { %416 = vmatpush.bf16.msrb.mxu0 %v537_v1 }
  0x47   :  { %429 = vmatpush.bf16.msrb.mxu1 %v601_v4 }
  0x4a   :  { %417 = vmatpush.bf16.msrb.mxu0 %v529_v13 }
  0x4b   :  { %430 = vmatpush.bf16.msrb.mxu1 %v593_v16 }
  0xaa   :  { %v166_v20 = vpop.f32.mrf.mxu0 }
  0xab   :  { %v167_v21 = vadd.f32 %v166_v20, %v73_v18  ;;  %v179_v22 = vpop.f32.mrf.mxu1 }
  0xac   :  { %v180_v23 = vadd.f32 %v179_v22, %v74_v19 }
  0xad   :  { %v183_v24 = vmax.f32 %v167_v21, 0.0 }
  0xae   :  { %v184_v25 = vmax.f32 %v180_v23, 0.0 }
  0xaf   :  { %v187_v26 = vpack.c.bf16 %v183_v24, %v183_v24 }
  0xb0   :  { %v188_v27 = vpack.c.bf16 %v184_v25, %v184_v25 }
  0xb1   :  { %392 = vmatmul.bf16.vlgmr.msra.gmra.mxu2 %v187_v26  ;;  %418 = vmatmul.bf16.vlgmr.msrb.gmra.mxu0 %v187_v26 }
  0xb2   :  { %405 = vmatmul.bf16.vlgmr.msra.gmra.mxu3 %v188_v27  ;;  %431 = vmatmul.bf16.vlgmr.msrb.gmra.mxu1 %v188_v27  ;;  %v168_v28 = vpop.f32.mrf.mxu0 }
  0xb3   :  { %v181_v29 = vpop.f32.mrf.mxu1 }
 0x12e   :  { %v419_v31 = vpop.f32.mrf.mxu0 }
 0x12f   :  { %v432_v33 = vpop.f32.mrf.mxu1 }
 0x130   :  { %v433_v34 = vadd.f32 %v432_v33, %v419_v31 }
 0x132   :  { %v449_v35 = vadd.f32 %v445_v32, %v433_v34 }
 0x134   :  { %451 = vst [vmem:[%s814_s5 + $0x8] sm:$0xff] %v449_v35  ;;  %v393_v36 = vpop.f32.mrf.mxu2 }
 0x135   :  { %v406_v38 = vpop.f32.mrf.mxu3 }
 0x136   :  { %v407_v39 = vadd.f32 %v406_v38, %v393_v36  ;;  %v421_v40 = vpop.f32.mrf.mxu0 }
 0x137   :  { %v434_v41 = vpop.f32.mrf.mxu1 }
 0x138   :  { %v448_v42 = vadd.f32 %v444_v37, %v407_v39 }
 0x13a   :  { %450 = vst [vmem:[%s814_s5] sm:$0xff] %v448_v42 }
 0x13c   :  { %v395_v43 = vpop.f32.mrf.mxu2 }
 0x13d   :  { %v408_v44 = vpop.f32.mrf.mxu3 }
 0x13e   :  { %456 = vsyncpa [#allocation4], 1 }
 0x13f   :  { %457 = vsyncpa [#allocation6], 1 }

</bundles_post_ra>
